<compile_context>
chip_gen: v5e
topology: v5e:2x2
jax: 0.10.0
libtpu: 0.0.40
codegen_flags: <defaults>
</compile_context>

<pallas_src>
import jax
import jax.numpy as jnp
from jax.experimental import pallas as pl
from jax.experimental.pallas import tpu as pltpu


def _matching_head_kernel(x_ref, w1_ref, b1_ref, w2_ref, b2_ref, o_ref):
    """One batch tile of the MatchingHead forward.

    x_ref : (tile_b, H)  token-0 activations (matmul dtype), auto-pipelined
    w1_ref: (H, H)       pooler.dense weight, (in, out) layout, VMEM-resident
    b1_ref: (1, H)       pooler.dense bias, f32
    w2_ref: (1, H)       fc weight as a row, f32
    b2_ref: (1,)         fc bias, SMEM scalar
    o_ref : (1, tile_b)  lane-dense f32 logits for this batch tile
    """
    b2 = b2_ref[0]                                         # SMEM scalar read

    # Pooler: MXU matmul (bf16 in / f32 accumulate), bias + tanh in f32 (EUP).
    h = jnp.dot(x_ref[...], w1_ref[...], preferred_element_type=jnp.float32)
    h = jnp.tanh(h + b1_ref[...])

    # fc (H -> 1): VPU multiply + XLU lane reduction (an N=1 MXU matmul would
    # waste the systolic array); relayout the per-row sums to a lane-dense
    # (1, tile_b) row so the store is unmasked and contiguous.
    logits = jnp.sum(h * w2_ref[...], axis=-1)             # (tile_b,)
    o_ref[...] = (logits + b2)[None, :].astype(o_ref.dtype)


def _round_up(n, m):
    return ((n + m - 1) // m) * m


def _choose_tiling(batch, act_itemsize):
    """Pick (tile_b, num_tiles) for the batch axis.

    * Small / moderate batch: a single tile, batch rounded up to the sublane
      pack (8 rows f32, 16 rows bf16).  This regime is weight-HBM-bound and
      splitting batch would only duplicate the resident-weight fetch.
    * Large batch: 256-row tiles (matches the v6e/v7x MXU) and an even tile
      count so the "parallel" grid axis splits evenly across v7x's two
      TensorCores (the extra padded tile costs at most 1/num_tiles compute).
    """
    row_align = max(8, 32 // act_itemsize)
    if batch <= 512:
        return _round_up(batch, row_align), 1
    tile_b = 256
    num_tiles = pl.cdiv(batch, tile_b)
    if num_tiles % 2:
        num_tiles += 1
    return tile_b, num_tiles


def matching_head(x, w_dense, b_dense, w_fc, b_fc, *, matmul_dtype=jnp.bfloat16):
    """MatchingHead forward.

    x:       (B, S, H) hidden states
    w_dense: (H, H)    pooler.dense weight, stored transposed as (in, out)
    b_dense: (H,)      pooler.dense bias
    w_fc:    (H, 1)    fc weight, stored transposed as (in, out)
    b_fc:    (1,)      fc bias
    matmul_dtype: dtype fed to the MXU for the pooler matmul (accumulation is
        always f32).  bf16 by default; pass jnp.float32 for bit-exact checks.
    Returns: (B, 1) f32 logits.
    """
    B, S, H = x.shape
    act_itemsize = jnp.dtype(matmul_dtype).itemsize
    tile_b, num_tiles = _choose_tiling(B, act_itemsize)
    b_pad = tile_b * num_tiles

    # Token-0 slice + matmul-dtype cast in the wrapper; pad batch to the tile
    # grid (padded rows produce garbage logits that are sliced off below).
    x0 = x[:, 0, :].astype(matmul_dtype)
    if b_pad != B:
        x0 = jnp.pad(x0, ((0, b_pad - B), (0, 0)))

    w1 = w_dense.astype(matmul_dtype)                       # (H, H) (in, out)
    b1 = b_dense.reshape(1, H).astype(jnp.float32)          # (1, H)
    w2_row = w_fc.reshape(1, H).astype(jnp.float32)         # (1, H)
    b2 = b_fc.reshape(1).astype(jnp.float32)                # (1,) SMEM scalar

    w_itemsize = jnp.dtype(w1.dtype).itemsize
    cost = pl.CostEstimate(
        flops=2 * b_pad * H * H + 3 * b_pad * H,
        transcendentals=b_pad * H,
        bytes_accessed=(b_pad * H * act_itemsize             # token-0 rows
                        + H * H * w_itemsize                 # W_dense (once)
                        + 2 * H * 4 + 4                      # biases + fc row
                        + b_pad * 4),                        # logits
    )

    # VMEM budget: double-buffered resident W1 + double-buffered activation
    # tiles + f32 temporaries, with headroom.  Matters on v5e's 16 MiB scoped
    # default.
    # TODO(synk): for H >~ 2.4k f32 / 3.4k bf16 the resident W1 no longer fits
    # v7x's 64 MiB VMEM; add an innermost "arbitrary" K grid axis streaming W1
    # in (tk, H) slabs with an f32 accumulator scratch + pl.when epilogue.
    vmem_est = (2 * H * H * w_itemsize
                + 2 * tile_b * H * act_itemsize
                + 3 * tile_b * H * 4
                + 4 * H * 4
                + 4 * tile_b * 4
                + (2 << 20))
    vmem_limit = int(min(max(vmem_est, 32 << 20), 100 << 20))

    out = pl.pallas_call(
        _matching_head_kernel,
        out_shape=jax.ShapeDtypeStruct((1, b_pad), jnp.float32),
        grid=(num_tiles,),
        in_specs=[
            pl.BlockSpec((tile_b, H), lambda i: (i, 0)),         # x0 (pipelined)
            pl.BlockSpec((H, H), lambda i: (0, 0)),              # W1, resident
            pl.BlockSpec((1, H), lambda i: (0, 0)),              # b1, resident
            pl.BlockSpec((1, H), lambda i: (0, 0)),              # fc row
            pl.BlockSpec(memory_space=pltpu.MemorySpace.SMEM),   # b_fc scalar
        ],
        out_specs=pl.BlockSpec((1, tile_b), lambda i: (0, i)),   # lane-dense
        compiler_params=pltpu.CompilerParams(
            dimension_semantics=("parallel",),    # batch tiles -> 2 TCs on v7x
            vmem_limit_bytes=vmem_limit,
        ),
        cost_estimate=cost,
    )(x0, w1, b1, w2_row, b2)

    return out[0, :B].reshape(B, 1)


def reference(x, w_dense, b_dense, w_fc, b_fc):
    pooled = jnp.tanh(x[:, 0, :] @ w_dense + b_dense)
    return pooled @ w_fc + b_fc


if __name__ == "__main__":
    B, S, H = 2, 8, 32
    key = jax.random.PRNGKey(0)
    kx, kw1, kb1, kw2, kb2 = jax.random.split(key, 5)

    x = jax.random.normal(kx, (B, S, H), dtype=jnp.float32)
    # Synthetic nn.Linear(H, H) and nn.Linear(H, 1) params, stored (in, out).
    w_dense = jax.random.normal(kw1, (H, H), dtype=jnp.float32) * 0.05
    b_dense = jax.random.normal(kb1, (H,), dtype=jnp.float32) * 0.05
    w_fc = jax.random.normal(kw2, (H, 1), dtype=jnp.float32) * 0.05
    b_fc = jax.random.normal(kb2, (1,), dtype=jnp.float32) * 0.05

    ref = reference(x, w_dense, b_dense, w_fc, b_fc)

    # f32 MXU path: tight check against the f32 PyTorch-equivalent reference.
    out_f32 = jax.block_until_ready(
        matching_head(x, w_dense, b_dense, w_fc, b_fc, matmul_dtype=jnp.float32))
    assert out_f32.shape == (B, 1), out_f32.shape
    assert out_f32.dtype == jnp.float32, out_f32.dtype
    assert jnp.allclose(out_f32, ref, atol=1e-5, rtol=1e-5), (out_f32, ref)

    # Default bf16 MXU path (the fast production path): loose tolerance.
    out_bf16 = jax.block_until_ready(
        matching_head(x, w_dense, b_dense, w_fc, b_fc))
    assert out_bf16.shape == (B, 1), out_bf16.shape
    assert out_bf16.dtype == jnp.float32, out_bf16.dtype
    assert jnp.allclose(out_bf16, ref, atol=2e-2, rtol=2e-2), (out_bf16, ref)

    print("KERNEL_OK")
</pallas_src>

<mosaic_0001>
module attributes {stable_mosaic.version = 11 : i64} {
  func.func @_matching_head_kernel(%arg0: i32, %arg1: memref<8x32xf32, #tpu.memory_space<vmem>>, %arg2: memref<32x32xf32, #tpu.memory_space<vmem>>, %arg3: memref<1x32xf32, #tpu.memory_space<vmem>>, %arg4: memref<1x32xf32, #tpu.memory_space<vmem>>, %arg5: memref<1xf32, #tpu.memory_space<smem>>, %arg6: memref<1x8xf32, #tpu.memory_space<vmem>>) attributes {dimension_semantics = [#tpu.dimension_semantics<parallel>], iteration_bounds = array<i64: 1>, scalar_prefetch = 0 : i64, scratch_operands = 0 : i64, tpu.core_type = #tpu.core_type<tc>, window_params = [{transform_indices = @transform_0, window_bounds = array<i64: 8, 32>}, {pipeline_mode = #tpu.pipeline_mode<synchronous>, transform_indices = @transform_1, window_bounds = array<i64: 32, 32>}, {pipeline_mode = #tpu.pipeline_mode<synchronous>, transform_indices = @transform_2, window_bounds = array<i64: 1, 32>}, {pipeline_mode = #tpu.pipeline_mode<synchronous>, transform_indices = @transform_3, window_bounds = array<i64: 1, 32>}, {transform_indices = @transform_4, window_bounds = array<i64: 1>}, {transform_indices = @transform_5, window_bounds = array<i64: 1, 8>}]} {
    %c0 = arith.constant 0 : index
    %0 = memref.load %arg5[%c0] : memref<1xf32, #tpu.memory_space<smem>>
    %c0_0 = arith.constant 0 : index
    %c0_1 = arith.constant 0 : index
    %1 = vector.load %arg1[%c0_0, %c0_1] : memref<8x32xf32, #tpu.memory_space<vmem>>, vector<8x32xf32>
    %c0_2 = arith.constant 0 : index
    %c0_3 = arith.constant 0 : index
    %2 = vector.load %arg2[%c0_2, %c0_3] : memref<32x32xf32, #tpu.memory_space<vmem>>, vector<32x32xf32>
    %cst = arith.constant dense<0.000000e+00> : vector<8x32xf32>
    %3 = tpu.matmul %1, %2, %cst {dimension_numbers = #tpu.dot_dimension_numbers<[1], [0], [0], [1], [0, 0, 1, 1], [], []>} : vector<8x32xf32>, vector<32x32xf32>, vector<8x32xf32> -> vector<8x32xf32>
    %c0_4 = arith.constant 0 : index
    %c0_5 = arith.constant 0 : index
    %4 = vector.load %arg3[%c0_4, %c0_5] : memref<1x32xf32, #tpu.memory_space<vmem>>, vector<1x32xf32>
    %5 = vector.broadcast %4 : vector<1x32xf32> to vector<8x32xf32>
    %6 = arith.addf %3, %5 : vector<8x32xf32>
    %7 = math.tanh %6 : vector<8x32xf32>
    %c0_6 = arith.constant 0 : index
    %c0_7 = arith.constant 0 : index
    %8 = vector.load %arg4[%c0_6, %c0_7] : memref<1x32xf32, #tpu.memory_space<vmem>>, vector<1x32xf32>
    %9 = vector.broadcast %8 : vector<1x32xf32> to vector<8x32xf32>
    %10 = arith.mulf %7, %9 : vector<8x32xf32>
    %cst_8 = arith.constant dense<0.000000e+00> : vector<8xf32>
    %11 = vector.multi_reduction <add>, %10, %cst_8 [1] : vector<8x32xf32> to vector<8xf32>
    %12 = vector.broadcast %0 : f32 to vector<8xf32>
    %13 = arith.addf %11, %12 : vector<8xf32>
    %14 = vector.shape_cast %13 : vector<8xf32> to vector<1x8xf32>
    %c0_9 = arith.constant 0 : index
    %c0_10 = arith.constant 0 : index
    %15 = vector.load %arg6[%c0_9, %c0_10] : memref<1x8xf32, #tpu.memory_space<vmem>>, vector<1x8xf32>
    tpu.vector_store %arg6[%c0_9, %c0_10], %14 {strides = array<i32>} : memref<1x8xf32, #tpu.memory_space<vmem>>, vector<1x8xf32>,
    return
  }
  func.func @transform_0(%arg0: i32) -> (i32, i32) {
    %c0_i32 = arith.constant 0 : i32
    %c0_i32_0 = arith.constant 0 : i32
    return %arg0, %c0_i32 : i32, i32
  }
  func.func @transform_1(%arg0: i32) -> (i32, i32) {
    %c0_i32 = arith.constant 0 : i32
    %c0_i32_0 = arith.constant 0 : i32
    %c0_i32_1 = arith.constant 0 : i32
    return %c0_i32, %c0_i32_0 : i32, i32
  }
  func.func @transform_2(%arg0: i32) -> (i32, i32) {
    %c0_i32 = arith.constant 0 : i32
    %c0_i32_0 = arith.constant 0 : i32
    %c0_i32_1 = arith.constant 0 : i32
    return %c0_i32, %c0_i32_0 : i32, i32
  }
  func.func @transform_3(%arg0: i32) -> (i32, i32) {
    %c0_i32 = arith.constant 0 : i32
    %c0_i32_0 = arith.constant 0 : i32
    %c0_i32_1 = arith.constant 0 : i32
    return %c0_i32, %c0_i32_0 : i32, i32
  }
  func.func @transform_4(%arg0: i32) -> i32 {
    %c0_i32 = arith.constant 0 : i32
    %c0_i32_0 = arith.constant 0 : i32
    return %c0_i32 : i32
  }
  func.func @transform_5(%arg0: i32) -> (i32, i32) {
    %c0_i32 = arith.constant 0 : i32
    %c0_i32_0 = arith.constant 0 : i32
    return %c0_i32, %arg0 : i32, i32
  }
}

</mosaic_0001>

<bundles_post_ra>
// kernel: tpu_custom_call.1
= control target key start
LH: loop header
LB: loop body
LE: loop exit
PB: predicated region body
PF: predicated region fallthrough
CT: control target
= control target key end

     0   :  { %11 = vsyncpa [#allocation4], 0  ;;  %s263_s0 = inlined_call_operand.hbm [shape: f32[8,32], index: 0, kind: input, shape index: {}]   ;;  %s264_s1 = inlined_call_operand.hbm [shape: f32[32,32], index: 1, kind: input, shape index: {}]   ;;  %s265_s2 = inlined_call_operand.vmem [shape: f32[1,32], index: 2, kind: input, shape index: {}]   ;;  %s266_s3 = inlined_call_operand.vmem [shape: f32[1,32], index: 3, kind: input, shape index: {}]   ;;  %s267_s4 = inlined_call_operand.<no memory space> [shape: f32[1], index: 4, kind: input, shape index: {}]   ;;  %s268_s5 = inlined_call_operand.hbm [shape: f32[1,8], index: 5, kind: output, shape index: {}]  }
   0x1   :  { %12 = vsyncpa [#allocation7], 0 }
   0x2   :  { %13 = vsyncpa [#allocation5], 0  ;;  %s19_s20 = sshll.u32 %s263_s0, 4  ;;  %s210_s21 = smov [#allocation3]   ;;  %s20_s20 = int_to_ptr.hbm [resolvable:$true] %s19_s20 }
   0x3   :  { %s21_s22 = sshll.u32 %s210_s21, 4  ;;  %s29_s25 = sshll.u32 %s264_s1, 4  ;;  %s22_s22 = int_to_ptr.vmem [resolvable:$true] %s21_s22  ;;  %s30_s25 = int_to_ptr.hbm [resolvable:$true] %s29_s25 }
   0x4   :  { %24 = dma.hbm_to_vmem [thread:$0]  %s20_s20, 128, %s22_s22, [#allocation4]  }
   0x5   :  { %s211_s26 = smov [#allocation6]   ;;  %s212_s28 = smov 128  }
   0x6   :  { %s31_s27 = sshll.u32 %s211_s26, 4  ;;  %s213_s29 = smov 8   ;;  %s32_s27 = int_to_ptr.vmem [resolvable:$true] %s31_s27 }
   0x7   :  { %37 = dma.hbm_to_vmem [thread:$0]  %s30_s25, 512, %s32_s27, [#allocation7], %s212_s28, %s212_s28, %s213_s29  }
   0x8   :  { %204 = dma.done.wait [#allocation4], 128  }
   0x9   :  { %205 = vsyncadd [#allocation4], 4294967168 }
   0xa   :  { %206 = dma.done.wait [#allocation7], 512  }
   0xb   :  { %207 = vsyncadd [#allocation7], 4294966784  ;;  %v57_v0 = vld [vmem:[#allocation6 + $0x18] sm:$0xff]  ;;  %v56_v1 = vld [vmem:[#allocation6 + $0x10] sm:$0xff]  ;;  %vm62_vm0 = vcmask 261120   ;;  %v98_v12 = vlaneseq  ;;  %v95_v13 = vstv %s267_s4  ;;  %s214_s9 = smov [#allocation8]  }
   0xc   :  { %78 = vmatpush.msra.mxu0 %v57_v0  ;;  %v55_v2 = vld [vmem:[#allocation6 + $0x8] sm:$0xff]  ;;  %v54_v3 = vld [vmem:[#allocation6] sm:$0xff]  ;;  %v53_v4 = vld [vmem:[#allocation3] sm:$0xff]  ;;  %s111_s12 = sshll.u32 %s268_s5, 4  ;;  %vm102_vm1 = vcmask 57344   ;;  %s112_s12 = int_to_ptr.hbm [resolvable:$true] %s111_s12 }
   0xd   :  { %v128_v5 = vld [vmem:[%s265_s2] ss:$0 sm:$0xff]  ;;  %v99_v14 = vand.u32 127, %v98_v12  ;;  %s109_s2 = sshll.u32 %s214_s9, 4  ;;  %s110_s2 = int_to_ptr.vmem [resolvable:$true] %s109_s2 }
   0xe   :  { %79 = vmatpush.msra.mxu0 %v56_v1  ;;  %v129_v8 = vld [vmem:[%s266_s3] ss:$0 sm:$0xff] }
  0x10   :  { %80 = vmatpush.msra.mxu0 %v55_v2 }
  0x12   :  { %81 = vmatpush.msra.mxu0 %v54_v3 }
  0x13   :  { %122 = vmatmul.msk.f32.vlgmr.msra.gmra.mxu0 %vm62_vm0, %v53_v4 }
  0x90   :  { %v83_v6 = vpop.f32.mrf.mxu0 }
  0x91   :  { %v84_v7 = vadd.f32 %v128_v5, %v83_v6 }
  0x93   :  { %130 = vtanh.f32 %v84_v7 }
  0x99   :  { %v131_v9 = vpop.eup %130 }
  0x9a   :  { %v91_v10 = vmul.f32 %v131_v9, %v129_v8 }
  0x9c   :  { %v92_v11 = vsel %vm62_vm0, %v91_v10, 0.0 }
  0x9d   :  { %93 = vadd.xlane.f32.xlu0 %v92_v11 }
 0x110   :  { %v94_v15 = vpop.xlane.xlu0 %93 }
 0x111   :  { %v96_v16 = vadd.f32 %v95_v13, %v94_v15 }
 0x113   :  { %v100_v17 = vperm.slane %v96_v16, %v99_v14 }
 0x115   :  { %103 = vst.msk [vmem:[#allocation8] sm:$0x1] %vm102_vm1, %v100_v17 }
 0x116   :  { %114 = dma.vmem_to_hbm [thread:$0]  %s110_s2, 16, %s112_s12, [#allocation5]  }
 0x117   :  { %208 = dma.done.wait [#allocation5], 16  }
 0x118   :  { %209 = vsyncadd [#allocation5], 4294967280 }
 0x119   :  { %119 = vsyncpa [#allocation4], 1 }
 0x11a   :  { %120 = vsyncpa [#allocation7], 1 }
 0x11b   :  { %121 = vsyncpa [#allocation5], 1 }

</bundles_post_ra>
